<compile_context>
chip_gen: v6e
topology: v6e:2x2x1
jax: 0.10.0
libtpu: 0.0.40
codegen_flags: <defaults>
</compile_context>

<pallas_src>
import functools

import jax
import jax.numpy as jnp
from jax.experimental import pallas as pl
from jax.experimental.pallas import tpu as pltpu


def _focal_kernel(pred_ref, label_ref, out_ref, acc_ref, *, gamma, alpha,
                  n_rows, block_rows, blocks_per_core, num_blocks, apply_mask):
    core = pl.program_id(0)   # "parallel" axis (megacore shard on v7x)
    j = pl.program_id(1)      # "arbitrary" reduction axis (row blocks per core)

    @pl.when(j == 0)
    def _():
        acc_ref[...] = jnp.zeros_like(acc_ref)

    x = pred_ref[...].astype(jnp.float32)
    y = label_ref[...].astype(jnp.float32)

    # Numerically stable BCE-with-logits. e = exp(-|x|) is reused for the
    # sigmoid below, so one exp + one log1p transcendental per element.
    e = jnp.exp(-jnp.abs(x))
    bce = jnp.maximum(x, 0.0) - x * y + jnp.log1p(e)

    # sigmoid(x) = 1/(1+e) for x >= 0, e/(1+e) for x < 0 (no extra exp).
    # approx vrcp (EUP, ~2^-12) + one Newton-Raphson step (2 VPU ops that hide
    # under EUP latency) restores ~f32 accuracy, well inside 1e-5 parity.
    den = 1.0 + e
    r = pl.reciprocal(den, approx=True)
    r = r * (2.0 - den * r)
    p = jnp.where(x >= 0.0, r, e * r)

    # t = 1 - p_t = y + p - 2*y*p  (clamp guards sqrt against fp rounding with
    # soft labels; binary labels are exact either way).
    t = jnp.maximum(y + p - 2.0 * y * p, 0.0)
    if gamma == 1.5:
        mod = t * jnp.sqrt(t)          # t**1.5 without exp/log
    elif gamma == 2.0:
        mod = t * t
    elif gamma == 1.0:
        mod = t
    else:
        mod = jnp.power(t, gamma)      # general fallback
    loss = bce * mod

    if alpha > 0:  # matches the PyTorch module's `if alpha > 0:` gate exactly
        # label*alpha + (1-label)*(1-alpha) == (1-alpha) + label*(2*alpha-1)
        loss = loss * ((1.0 - alpha) + y * (2.0 * alpha - 1.0))

    c_eff = loss.shape[-1]

    def accumulate(vals):
        # Split only the sublane axis (tile-boundary reshape -> stays a view);
        # tree-add happens on values already in vregs, then one small (8, C)
        # VMEM read-modify-write instead of a full (br, C) one.
        acc_ref[...] = acc_ref[...] + jnp.sum(
            vals.reshape(block_rows // 8, 8, c_eff), axis=0)

    if apply_mask:
        blk = core * blocks_per_core + j   # unclamped global block index

        @pl.when(blk >= num_blocks - 1)    # overhang block / clamped duplicate
        def _():
            row0 = blk * block_rows
            rows = row0 + jax.lax.broadcasted_iota(jnp.int32, loss.shape, 0)
            accumulate(jnp.where(rows < n_rows, loss, 0.0))

        @pl.when(blk < num_blocks - 1)     # interior blocks: no mask cost
        def _():
            accumulate(loss)
    else:
        accumulate(loss)

    @pl.when(j == pl.num_programs(1) - 1)
    def _():
        col = jnp.sum(acc_ref[...], axis=0, keepdims=True)    # (1, C)
        out_ref[...] = jnp.sum(col, axis=1, keepdims=True)    # (1, 1) per core


def _tpu_config():
    """Returns (is_v7x, vmem_block_budget_bytes, vmem_limit_bytes)."""
    kind = ""
    try:
        kind = jax.devices()[0].device_kind.lower()
    except Exception:
        pass
    if "v7" in kind:
        # 64 MiB physical VMEM per TC, 2 TCs per chip.
        return True, 24 * 1024 * 1024, 48 * 1024 * 1024
    if ("v2" in kind) or ("v3" in kind):
        # Conservative fallback for small-VMEM generations.
        return False, 8 * 1024 * 1024, 16 * 1024 * 1024
    # v5e / v6e: 128 MiB physical VMEM, single TensorCore.
    return False, 64 * 1024 * 1024, 96 * 1024 * 1024


def track_label_loss(pred, label, gamma=1.5, alpha=0.25, block_rows=1024):
    assert pred.shape == label.shape and pred.ndim == 2
    n, c = pred.shape
    orig_c = c  # mean over dim 1 -> final scale is 1/original C

    is_v7x, vmem_budget, vmem_limit = _tpu_config()

    # Lane-dense reshape: purely elementwise math + global sum, so any
    # contiguous 2D view is equivalent. Use it when C wastes vreg lanes.
    if (c % 128 != 0) and ((n * c) % 128 == 0):
        total = n * c
        w = 128
        for cand in (2048, 1024, 512, 256):
            if total % cand == 0:
                w = cand
                break
        pred = pred.reshape(total // w, w)
        label = label.reshape(total // w, w)
        n, c = pred.shape

    def round_up(a, m):
        return ((a + m - 1) // m) * m

    # Row alignment: 8 sublanes for 32-bit, 16 for bf16 packed tiles.
    min_itemsize = min(pred.dtype.itemsize, label.dtype.itemsize)
    align = max(8, 32 // max(1, min_itemsize))

    # Largest row block that (a) is align-multiple, (b) does not exceed the
    # padded row count, and (c) keeps 2 inputs x 2 pipeline buffers (in the
    # *input* dtype; f32 upcast happens in vregs) under the per-generation
    # VMEM budget. The accumulator is only (8, C) f32 and is ignored here.
    br = max(align, (int(block_rows) // align) * align)
    br = min(br, round_up(n, align))
    bytes_per_row = 2 * c * (pred.dtype.itemsize + label.dtype.itemsize)
    br = min(br, max(align, (vmem_budget // bytes_per_row) // align * align))

    num_blocks = pl.cdiv(n, br)
    # 2-way core split only on v7x (2 TCs/chip); on single-TC chips it would
    # just serialize and can add a wasted, fully-masked duplicate tail block.
    n_cores = 2 if (is_v7x and num_blocks >= 2) else 1
    bpc = pl.cdiv(num_blocks, n_cores)
    apply_mask = (n % br != 0) or (n_cores * bpc != num_blocks)

    def in_map(core, j):
        blk = jnp.minimum(core * bpc + j, num_blocks - 1)   # clamp duplicates
        return (blk, 0)

    kernel = functools.partial(
        _focal_kernel, gamma=float(gamma), alpha=float(alpha), n_rows=n,
        block_rows=br, blocks_per_core=bpc, num_blocks=num_blocks,
        apply_mask=apply_mask)

    partials = pl.pallas_call(
        kernel,
        out_shape=jax.ShapeDtypeStruct((n_cores, 1), jnp.float32),
        grid_spec=pltpu.PrefetchScalarGridSpec(
            num_scalar_prefetch=0,
            grid=(n_cores, bpc),
            in_specs=[
                pl.BlockSpec((br, c), in_map),
                pl.BlockSpec((br, c), in_map),
            ],
            out_specs=pl.BlockSpec((1, 1), lambda core, j: (core, 0)),
            scratch_shapes=[pltpu.VMEM((8, c), jnp.float32)],
        ),
        compiler_params=pltpu.CompilerParams(
            dimension_semantics=("parallel", "arbitrary"),
            vmem_limit_bytes=vmem_limit,
        ),
    )(pred, label)

    # mean over dim 1 then sum over rows == sum(loss) / C; scale applied once.
    return jnp.sum(partials) * (1.0 / orig_c)


def _reference(pred, label, gamma=1.5, alpha=0.25):
    x = pred.astype(jnp.float32)
    y = label.astype(jnp.float32)
    bce = jnp.maximum(x, 0.0) - x * y + jnp.log1p(jnp.exp(-jnp.abs(x)))
    p = jax.nn.sigmoid(x)
    p_t = y * p + (1 - y) * (1 - p)
    loss = bce * (1.0 - p_t) ** gamma
    if alpha > 0:
        loss = loss * (y * alpha + (1 - y) * (1 - alpha))
    return jnp.sum(jnp.mean(loss, axis=1))


if __name__ == "__main__":
    key = jax.random.PRNGKey(0)
    k1, k2, k3, k4, k5, k6, k7, k8 = jax.random.split(key, 8)

    # Test 1: small, tile-friendly shape, default settings (single block).
    N, C = 16, 256
    pred = jax.random.normal(k1, (N, C), dtype=jnp.float32)
    label = jax.random.bernoulli(k2, 0.3, (N, C)).astype(jnp.float32)
    out = jax.block_until_ready(track_label_loss(pred, label))
    ref = _reference(pred, label)
    assert jnp.allclose(out, ref, rtol=1e-5, atol=1e-5), (out, ref)

    # Test 2: N not divisible by block size -> multi-block reduction, overhang
    # masking, and (on v7x) the 2-core split with a clamped duplicate block.
    N2, C2 = 40, 256
    pred2 = jax.random.normal(k3, (N2, C2), dtype=jnp.float32)
    label2 = jax.random.bernoulli(k4, 0.3, (N2, C2)).astype(jnp.float32)
    out2 = jax.block_until_ready(track_label_loss(pred2, label2, block_rows=16))
    ref2 = _reference(pred2, label2)
    assert jnp.allclose(out2, ref2, rtol=1e-5, atol=1e-5), (out2, ref2)

    # Test 3: bf16 inputs (halved HBM traffic, 16-row packed-tile alignment).
    pred3 = pred[:8, :128].astype(jnp.bfloat16)
    label3 = label[:8, :128].astype(jnp.bfloat16)
    out3 = jax.block_until_ready(track_label_loss(pred3, label3))
    ref3 = _reference(pred3, label3)
    assert jnp.allclose(out3, ref3, rtol=1e-5, atol=1e-5), (out3, ref3)

    # Test 4: C not a multiple of 128 but N*C is -> lane-dense reshape path.
    N4, C4 = 64, 80
    pred4 = jax.random.normal(k5, (N4, C4), dtype=jnp.float32)
    label4 = jax.random.bernoulli(k6, 0.3, (N4, C4)).astype(jnp.float32)
    out4 = jax.block_until_ready(track_label_loss(pred4, label4))
    ref4 = _reference(pred4, label4)
    assert jnp.allclose(out4, ref4, rtol=1e-5, atol=1e-5), (out4, ref4)

    # Test 5: C not a multiple of 128 and N*C not 128-divisible -> lane-padded
    # full-width blocks; checks padding is not folded into the final reduce.
    N5, C5 = 10, 48
    pred5 = jax.random.normal(k7, (N5, C5), dtype=jnp.float32)
    label5 = jax.random.bernoulli(k8, 0.3, (N5, C5)).astype(jnp.float32)
    out5 = jax.block_until_ready(track_label_loss(pred5, label5))
    ref5 = _reference(pred5, label5)
    assert jnp.allclose(out5, ref5, rtol=1e-5, atol=1e-5), (out5, ref5)

    print("KERNEL_OK")
</pallas_src>

<mosaic_0001>
module attributes {stable_mosaic.version = 11 : i64} {
  func.func @_focal_kernel(%arg0: i32, %arg1: i32, %arg2: memref<16x256xf32, #tpu.memory_space<vmem>>, %arg3: memref<16x256xf32, #tpu.memory_space<vmem>>, %arg4: memref<1x1xf32, #tpu.memory_space<vmem>>, %arg5: memref<8x256xf32, #tpu.memory_space<vmem>>) attributes {dimension_semantics = [#tpu.dimension_semantics<parallel>, #tpu.dimension_semantics<arbitrary>], iteration_bounds = array<i64: 1, 1>, scalar_prefetch = 0 : i64, scratch_operands = 1 : i64, tpu.core_type = #tpu.core_type<tc>, window_params = [{transform_indices = @transform_0, window_bounds = array<i64: 16, 256>}, {transform_indices = @transform_1, window_bounds = array<i64: 16, 256>}, {transform_indices = @transform_2, window_bounds = array<i64: 1, 1>}]} {
    %c0_i32 = arith.constant 0 : i32
    %0 = arith.cmpi eq, %arg1, %c0_i32 : i32
    %1 = arith.extui %0 : i1 to i32
    %c0_i32_0 = arith.constant 0 : i32
    %2 = arith.cmpi ne, %1, %c0_i32_0 : i32
    scf.if %2 {
      %cst_19 = arith.constant 0.000000e+00 : f32
      %49 = vector.broadcast %cst_19 : f32 to vector<8x256xf32>
      %c0_20 = arith.constant 0 : index
      %c0_21 = arith.constant 0 : index
      %50 = vector.load %arg5[%c0_20, %c0_21] : memref<8x256xf32, #tpu.memory_space<vmem>>, vector<8x256xf32>
      tpu.vector_store %arg5[%c0_20, %c0_21], %49 {strides = array<i32>} : memref<8x256xf32, #tpu.memory_space<vmem>>, vector<8x256xf32>,
    } else {
    }
    %c0 = arith.constant 0 : index
    %c0_1 = arith.constant 0 : index
    %3 = vector.load %arg2[%c0, %c0_1] : memref<16x256xf32, #tpu.memory_space<vmem>>, vector<16x256xf32>
    %c0_2 = arith.constant 0 : index
    %c0_3 = arith.constant 0 : index
    %4 = vector.load %arg3[%c0_2, %c0_3] : memref<16x256xf32, #tpu.memory_space<vmem>>, vector<16x256xf32>
    %5 = math.absf %3 : vector<16x256xf32>
    %cst = arith.constant 0.000000e+00 : f32
    %6 = vector.broadcast %cst : f32 to vector<16x256xf32>
    %7 = arith.subf %6, %5 : vector<16x256xf32>
    %8 = math.exp %7 : vector<16x256xf32>
    %cst_4 = arith.constant 0.000000e+00 : f32
    %9 = vector.broadcast %cst_4 : f32 to vector<16x256xf32>
    %10 = arith.maximumf %3, %9 : vector<16x256xf32>
    %11 = arith.mulf %3, %4 : vector<16x256xf32>
    %12 = arith.subf %10, %11 : vector<16x256xf32>
    %13 = math.log1p %8 : vector<16x256xf32>
    %14 = arith.addf %12, %13 : vector<16x256xf32>
    %cst_5 = arith.constant 1.000000e+00 : f32
    %15 = vector.broadcast %cst_5 : f32 to vector<16x256xf32>
    %16 = arith.addf %15, %8 : vector<16x256xf32>
    %17 = tpu.reciprocal %16 {approx = true} : vector<16x256xf32> -> vector<16x256xf32>
    %18 = arith.mulf %16, %17 : vector<16x256xf32>
    %cst_6 = arith.constant 2.000000e+00 : f32
    %19 = vector.broadcast %cst_6 : f32 to vector<16x256xf32>
    %20 = arith.subf %19, %18 : vector<16x256xf32>
    %21 = arith.mulf %17, %20 : vector<16x256xf32>
    %cst_7 = arith.constant 0.000000e+00 : f32
    %22 = vector.broadcast %cst_7 : f32 to vector<16x256xf32>
    %23 = arith.cmpf oge, %3, %22 : vector<16x256xf32>
    %24 = arith.mulf %8, %21 : vector<16x256xf32>
    %25 = arith.select %23, %21, %24 : vector<16x256xi1>, vector<16x256xf32>
    %26 = arith.addf %4, %25 : vector<16x256xf32>
    %cst_8 = arith.constant 2.000000e+00 : f32
    %27 = vector.broadcast %cst_8 : f32 to vector<16x256xf32>
    %28 = arith.mulf %27, %4 : vector<16x256xf32>
    %29 = arith.mulf %28, %25 : vector<16x256xf32>
    %30 = arith.subf %26, %29 : vector<16x256xf32>
    %cst_9 = arith.constant 0.000000e+00 : f32
    %31 = vector.broadcast %cst_9 : f32 to vector<16x256xf32>
    %32 = arith.maximumf %30, %31 : vector<16x256xf32>
    %33 = math.sqrt %32 : vector<16x256xf32>
    %34 = arith.mulf %32, %33 : vector<16x256xf32>
    %35 = arith.mulf %14, %34 : vector<16x256xf32>
    %cst_10 = arith.constant -5.000000e-01 : f32
    %36 = vector.broadcast %cst_10 : f32 to vector<16x256xf32>
    %37 = arith.mulf %4, %36 : vector<16x256xf32>
    %cst_11 = arith.constant 7.500000e-01 : f32
    %38 = vector.broadcast %cst_11 : f32 to vector<16x256xf32>
    %39 = arith.addf %38, %37 : vector<16x256xf32>
    %40 = arith.mulf %35, %39 : vector<16x256xf32>
    %c0_12 = arith.constant 0 : index
    %c0_13 = arith.constant 0 : index
    %41 = vector.load %arg5[%c0_12, %c0_13] : memref<8x256xf32, #tpu.memory_space<vmem>>, vector<8x256xf32>
    %42 = vector.shape_cast %40 : vector<16x256xf32> to vector<2x8x256xf32>
    %cst_14 = arith.constant dense<0.000000e+00> : vector<8x256xf32>
    %43 = vector.multi_reduction <add>, %42, %cst_14 [0] : vector<2x8x256xf32> to vector<8x256xf32>
    %44 = arith.addf %41, %43 : vector<8x256xf32>
    %c0_15 = arith.constant 0 : index
    %c0_16 = arith.constant 0 : index
    %45 = vector.load %arg5[%c0_15, %c0_16] : memref<8x256xf32, #tpu.memory_space<vmem>>, vector<8x256xf32>
    tpu.vector_store %arg5[%c0_15, %c0_16], %44 {strides = array<i32>} : memref<8x256xf32, #tpu.memory_space<vmem>>, vector<8x256xf32>,
    %c0_i32_17 = arith.constant 0 : i32
    %46 = arith.cmpi eq, %arg1, %c0_i32_17 : i32
    %47 = arith.extui %46 : i1 to i32
    %c0_i32_18 = arith.constant 0 : i32
    %48 = arith.cmpi ne, %47, %c0_i32_18 : i32
    scf.if %48 {
      %c0_19 = arith.constant 0 : index
      %c0_20 = arith.constant 0 : index
      %49 = vector.load %arg5[%c0_19, %c0_20] : memref<8x256xf32, #tpu.memory_space<vmem>>, vector<8x256xf32>
      %cst_21 = arith.constant dense<0.000000e+00> : vector<256xf32>
      %50 = vector.multi_reduction <add>, %49, %cst_21 [0] : vector<8x256xf32> to vector<256xf32>
      %51 = vector.shape_cast %50 : vector<256xf32> to vector<1x256xf32>
      %cst_22 = arith.constant dense<0.000000e+00> : vector<1xf32>
      %52 = vector.multi_reduction <add>, %51, %cst_22 [1] : vector<1x256xf32> to vector<1xf32>
      %53 = vector.shape_cast %52 : vector<1xf32> to vector<1x1xf32>
      %c0_23 = arith.constant 0 : index
      %c0_24 = arith.constant 0 : index
      %54 = vector.load %arg4[%c0_23, %c0_24] : memref<1x1xf32, #tpu.memory_space<vmem>>, vector<1x1xf32>
      tpu.vector_store %arg4[%c0_23, %c0_24], %53 {strides = array<i32>} : memref<1x1xf32, #tpu.memory_space<vmem>>, vector<1x1xf32>,
    } else {
    }
    return
  }
  func.func @transform_0(%arg0: i32, %arg1: i32) -> (i32, i32) {
    %c1_i32 = arith.constant 1 : i32
    %0 = arith.muli %arg0, %c1_i32 : i32
    %1 = arith.addi %0, %arg1 : i32
    %c0_i32 = arith.constant 0 : i32
    %2 = arith.minsi %1, %c0_i32 : i32
    %c0_i32_0 = arith.constant 0 : i32
    %c0_i32_1 = arith.constant 0 : i32
    return %2, %c0_i32_0 : i32, i32
  }
  func.func @transform_1(%arg0: i32, %arg1: i32) -> (i32, i32) {
    %c1_i32 = arith.constant 1 : i32
    %0 = arith.muli %arg0, %c1_i32 : i32
    %1 = arith.addi %0, %arg1 : i32
    %c0_i32 = arith.constant 0 : i32
    %2 = arith.minsi %1, %c0_i32 : i32
    %c0_i32_0 = arith.constant 0 : i32
    %c0_i32_1 = arith.constant 0 : i32
    return %2, %c0_i32_0 : i32, i32
  }
  func.func @transform_2(%arg0: i32, %arg1: i32) -> (i32, i32) {
    %c0_i32 = arith.constant 0 : i32
    %c0_i32_0 = arith.constant 0 : i32
    return %arg0, %c0_i32 : i32, i32
  }
}

</mosaic_0001>

<bundles_post_ra>
// kernel: tpu_custom_call.1
= control target key start
LH: loop header
LB: loop body
LE: loop exit
PB: predicated region body
PF: predicated region fallthrough
CT: control target
= control target key end

     0   :  { %7 = vsyncpa [#allocation4], 0  ;;  %s576_s0 = inlined_call_operand.hbm [shape: f32[16,256], index: 0, kind: input, shape index: {}]   ;;  %s577_s1 = inlined_call_operand.hbm [shape: f32[16,256], index: 1, kind: input, shape index: {}]   ;;  %s578_s2 = inlined_call_operand.hbm [shape: f32[1,1], index: 2, kind: output, shape index: {}]  }
   0x1   :  { %8 = vsyncpa [#allocation7], 0 }
   0x2   :  { %9 = vsyncpa [#allocation5], 0  ;;  %s397_s9 = smov [#allocation3]  }
   0x3   :  { %s22_s10 = sshll.u32 %s397_s9, 4  ;;  %s23_s10 = int_to_ptr.vmem [resolvable:$true] %s22_s10 }
   0x4   :  { %s339_s11 = scalar_lea.vmem %s23_s10, 512  ;;  %p344_p1 = scmp.lt.s32.totalorder %s23_s10, %s23_s10 }
   0x5   :  { %p340_p0 = scmp.ne.s32.totalorder %s23_s10, %s339_s11  ;;  %p345_p2 = scmp.lt.s32.totalorder %s339_s11, %s339_s11 }
   0x7   :  { %p346_p3 = por %p345_p2, %p344_p1 }
   0x9   :  { %p347_p4 = pnand %p346_p3, %p340_p0 }
   0xb   :  { %350 = shalt.err (!%p347_p4)
}
   0xc   :  { %s398_s12 = smov 256   ;;  %s399_s13 = smov 16  }
   0xd   :  { %28 = dma.hbm_to_vmem [thread:$0]  %s576_s0, 512, %s23_s10, [#allocation4], %s398_s12, %s398_s12, %s399_s13  }
   0xe   :  { %s400_s16 = smov [#allocation6]  }
   0xf   :  { %s41_s17 = sshll.u32 %s400_s16, 4  ;;  %s42_s17 = int_to_ptr.vmem [resolvable:$true] %s41_s17 }
  0x10   :  { %s359_s18 = scalar_lea.vmem %s42_s17, 512  ;;  %p364_p6 = scmp.lt.s32.totalorder %s42_s17, %s42_s17 }
  0x11   :  { %p360_p5 = scmp.ne.s32.totalorder %s42_s17, %s359_s18  ;;  %p365_p7 = scmp.lt.s32.totalorder %s359_s18, %s359_s18 }
  0x13   :  { %p366_p8 = por %p365_p7, %p364_p6 }
  0x15   :  { %p367_p9 = pnand %p366_p8, %p360_p5 }
  0x17   :  { %370 = shalt.err (!%p367_p9)
}
  0x18   :  { %47 = dma.hbm_to_vmem [thread:$0]  %s577_s1, 512, %s42_s17, [#allocation7], %s398_s12, %s398_s12, %s399_s13  }
  0x19   :  { %391 = dma.done.wait [#allocation4], 512  }
  0x1a   :  { %392 = vsyncadd [#allocation4], 4294966784 }
  0x1b   :  { %393 = dma.done.wait [#allocation7], 512  }
  0x1c   :  { %394 = vsyncadd [#allocation7], 4294966784  ;;  %v423_v0 = vld [vmem:[#allocation3] sm:$0xff]  ;;  %v425_v1 = vld [vmem:[#allocation3 + $0x8] sm:$0xff]  ;;  %s401_s0 = smov [#allocation8]  }
  0x1d   :  { %v427_v2 = vld [vmem:[#allocation3 + $0x10] sm:$0xff]  ;;  %v429_v3 = vld [vmem:[#allocation3 + $0x18] sm:$0xff]  ;;  %v76_v4 = vand.u32 2147483647, %v423_v0  ;;  %v77_v5 = vand.u32 2147483647, %v425_v1 }
  0x1e   :  { %v78_v6 = vand.u32 2147483647, %v427_v2  ;;  %v79_v7 = vand.u32 2147483647, %v429_v3  ;;  %v447_v30 = vld [vmem:[#allocation6] sm:$0xff]  ;;  %v449_v33 = vld [vmem:[#allocation6 + $0x8] sm:$0xff] }
  0x1f   :  { %v80_v8 = vsub.f32 0.0, %v76_v4  ;;  %v81_v9 = vsub.f32 0.0, %v77_v5  ;;  %vm164_vm0 = vcmp.ge.f32.partialorder %v423_v0, 0.0  ;;  %v452_v36 = vld [vmem:[#allocation6 + $0x10] sm:$0xff]  ;;  %vm165_vm1 = vcmp.ge.f32.partialorder %v425_v1, 0.0  ;;  %v455_v39 = vld [vmem:[#allocation6 + $0x18] sm:$0xff] }
  0x20   :  { %v82_v10 = vsub.f32 0.0, %v78_v6  ;;  %v83_v11 = vsub.f32 0.0, %v79_v7  ;;  %vm166_vm2 = vcmp.ge.f32.partialorder %v427_v2, 0.0  ;;  %v180_v42 = vmul.f32 2.0, %v447_v30  ;;  %s280_s1 = sshll.u32 %s401_s0, 4  ;;  %s281_s1 = int_to_ptr.vmem [resolvable:$true] %s280_s1 }
  0x21   :  { %v84_v12 = vmul.f32 1.442695, %v80_v8  ;;  %v86_v13 = vmul.f32 1.442695, %v81_v9  ;;  %vm167_vm3 = vcmp.ge.f32.partialorder %v429_v3, 0.0  ;;  %v181_v45 = vmul.f32 2.0, %v449_v33  ;;  %p376_p11 = scmp.lt.s32.totalorder %s281_s1, %s281_s1 }
  0x22   :  { %v88_v14 = vmul.f32 1.442695, %v82_v10  ;;  %v90_v15 = vmul.f32 1.442695, %v83_v11  ;;  %v182_v48 = vmul.f32 2.0, %v452_v36  ;;  %v183_v51 = vmul.f32 2.0, %v455_v39 }
  0x23   :  { %299 = vpow2.f32 %v84_v12  ;;  %v92_v10 = vmax.f32 %v423_v0, 0.0  ;;  %s371_s21 = scalar_lea.vmem %s281_s1, 16  ;;  %s375_s22 = scalar_lea.vmem %s281_s1, 32 }
  0x24   :  { %301 = vpow2.f32 %v86_v13  ;;  %p372_p10 = scmp.ne.s32.totalorder %s281_s1, %s371_s21  ;;  %p377_p12 = scmp.lt.s32.totalorder %s375_s22, %s371_s21 }
  0x25   :  { %303 = vpow2.f32 %v88_v14 }
  0x26   :  { %305 = vpow2.f32 %v90_v15  ;;  %p378_p13 = por %p377_p12, %p376_p11 }
  0x28   :  { %p379_p0 = pnand %p378_p13, %p372_p10 }
  0x30   :  { %v435_v16 = vpop.eup %299 }
  0x31   :  { %v437_v17 = vpop.eup %301  ;;  %v104_v20 = vadd.f32 1.0, %v435_v16  ;;  %v107_v56 = vmul.f32 -0.5, %v435_v16 }
  0x32   :  { %v439_v18 = vpop.eup %303  ;;  %v113_v21 = vadd.f32 1.0, %v437_v17  ;;  %v116_v4 = vmul.f32 -0.5, %v437_v17 }
  0x33   :  { %v441_v19 = vpop.eup %305  ;;  %v122_v22 = vadd.f32 1.0, %v439_v18  ;;  %307 = vrcp.f32 %v104_v20  ;;  %v108_v13 = vadd.f32 1.0, %v107_v56  ;;  %v125_v14 = vmul.f32 -0.5, %v439_v18 }
  0x34   :  { %v131_v23 = vadd.f32 1.0, %v441_v19  ;;  %309 = vrcp.f32 %v113_v21  ;;  %v234_v56 = vmul.f32 -0.5, %v452_v36 }
  0x35   :  { %311 = vrcp.f32 %v122_v22 }
  0x36   :  { %313 = vrcp.f32 %v131_v23 }
  0x37   :  { %315 = vlog2.f32 %v104_v20 }
  0x38   :  { %317 = vlog2.f32 %v113_v21 }
  0x39   :  { %319 = vlog2.f32 %v122_v22 }
  0x3a   :  { %321 = vlog2.f32 %v131_v23 }
  0x40   :  { %v308_v24 = vpop.eup %307 }
  0x41   :  { %v310_v25 = vpop.eup %309  ;;  %v152_v26 = vmul.f32 %v308_v24, %v104_v20 }
  0x42   :  { %v312_v27 = vpop.eup %311  ;;  %v153_v28 = vmul.f32 %v310_v25, %v113_v21  ;;  %v117_v21 = vadd.f32 1.0, %v116_v4 }
  0x43   :  { %v314_v29 = vpop.eup %313  ;;  %v154_v31 = vmul.f32 %v312_v27, %v122_v22  ;;  %v156_v32 = vsub.f32 2.0, %v152_v26  ;;  %v134_v22 = vmul.f32 -0.5, %v441_v19  ;;  %v110_v26 = vand.u32 2147483647, %v435_v16 }
  0x44   :  { %v155_v34 = vmul.f32 %v314_v29, %v131_v23  ;;  %v157_v35 = vsub.f32 2.0, %v153_v28  ;;  %v316_v20 = vpop.eup %315  ;;  %v93_v28 = vmax.f32 %v425_v1, 0.0 }
  0x45   :  { %v158_v37 = vsub.f32 2.0, %v154_v31  ;;  %v160_v38 = vmul.f32 %v308_v24, %v156_v32  ;;  %v318_v24 = vpop.eup %317  ;;  %v97_v31 = vmul.f32 %v449_v33, %v425_v1  ;;  %v95_v32 = vmax.f32 %v429_v3, 0.0 }
  0x46   :  { %v159_v40 = vsub.f32 2.0, %v155_v34  ;;  %v161_v41 = vmul.f32 %v310_v25, %v157_v35  ;;  %v96_v25 = vmul.f32 %v447_v30, %v423_v0  ;;  %v109_v34 = vmul.f32 %v435_v16, %v108_v13 }
  0x47   :  { %v162_v43 = vmul.f32 %v312_v27, %v158_v37  ;;  %v168_v44 = vmul.f32 %v435_v16, %v160_v38  ;;  %v119_v27 = vand.u32 2147483647, %v437_v17  ;;  %v126_v0 = vadd.f32 1.0, %v125_v14  ;;  %v320_v37 = vpop.eup %319 }
  0x48   :  { %v163_v46 = vmul.f32 %v314_v29, %v159_v40  ;;  %v169_v47 = vmul.f32 %v437_v17, %v161_v41  ;;  %v94_v29 = vmax.f32 %v427_v2, 0.0  ;;  %v128_v35 = vand.u32 2147483647, %v439_v18 }
  0x49   :  { %v170_v49 = vmul.f32 %v439_v18, %v162_v43  ;;  %v172_v50 = vsel %vm164_vm0, %v160_v38, %v168_v44  ;;  %v106_v38 = vmul.f32 0.6931472, %v316_v20  ;;  %v115_v40 = vmul.f32 0.6931472, %v318_v24 }
  0x4a   :  { %v171_v52 = vmul.f32 %v441_v19, %v163_v46  ;;  %v173_v53 = vsel %vm165_vm1, %v161_v41, %v169_v47  ;;  %v176_v54 = vadd.f32 %v172_v50, %v447_v30  ;;  %v184_v55 = vmul.f32 %v180_v42, %v172_v50 }
  0x4b   :  { %v174_v57 = vsel %vm166_vm2, %v162_v43, %v170_v49  ;;  %v177_v58 = vadd.f32 %v173_v53, %v449_v33  ;;  %v185_v59 = vmul.f32 %v181_v45, %v173_v53  ;;  %v118_v41 = vmul.f32 %v437_v17, %v117_v21  ;;  %v322_v43 = vpop.eup %321 }
  0x4c   :  { %v175_v60 = vsel %vm167_vm3, %v163_v46, %v171_v52  ;;  %v178_v61 = vadd.f32 %v174_v57, %v452_v36  ;;  %v186_v62 = vmul.f32 %v182_v48, %v174_v57  ;;  %v188_v63 = vsub.f32 %v176_v54, %v184_v55 }
  0x4d   :  { %v179_v5 = vadd.f32 %v175_v60, %v455_v39  ;;  %v187_v6 = vmul.f32 %v183_v51, %v175_v60  ;;  %v189_v7 = vsub.f32 %v177_v58, %v185_v59  ;;  %v135_v42 = vadd.f32 1.0, %v134_v22 }
  0x4e   :  { %v190_v8 = vsub.f32 %v178_v61, %v186_v62  ;;  %v481_v9 = vmax.f32 %v188_v63, 0.0  ;;  %v98_v44 = vmul.f32 %v452_v36, %v427_v2  ;;  %vm510_vm4 = vcmp.lt.f32.partialorder %v110_v26, 0.0004427343 }
  0x4f   :  { %v191_v11 = vsub.f32 %v179_v5, %v187_v6  ;;  %v484_v12 = vmax.f32 %v189_v7, 0.0  ;;  %vm514_vm5 = vcmp.lt.f32.partialorder %v119_v27, 0.0004427343  ;;  %v137_v16 = vand.u32 2147483647, %v441_v19 }
  0x50   :  { %v487_v15 = vmax.f32 %v190_v8, 0.0  ;;  %323 = vrsqrt.f32 %v481_v9  ;;  %v99_v46 = vmul.f32 %v455_v39, %v429_v3  ;;  %v100_v47 = vsub.f32 %v92_v10, %v96_v25 }
  0x51   :  { %v491_v23 = vmax.f32 %v191_v11, 0.0  ;;  %325 = vrsqrt.f32 %v484_v12  ;;  %v101_v17 = vsub.f32 %v93_v28, %v97_v31  ;;  %v232_v48 = vmul.f32 -0.5, %v447_v30 }
  0x52   :  { %327 = vrsqrt.f32 %v487_v15  ;;  %v124_v49 = vmul.f32 0.6931472, %v320_v37  ;;  %v127_v2 = vmul.f32 %v439_v18, %v126_v0  ;;  %vm523_vm6 = vcmp.lt.f32.partialorder %v128_v35, 0.0004427343 }
  0x53   :  { %329 = vrsqrt.f32 %v491_v23  ;;  %v233_v51 = vmul.f32 -0.5, %v449_v33  ;;  %v112_v52 = vsel %vm510_vm4, %v109_v34, %v106_v38  ;;  %v121_v53 = vsel %vm514_vm5, %v118_v41, %v115_v40 }
  0x54   :  { %v133_v3 = vmul.f32 0.6931472, %v322_v43  ;;  %v136_v54 = vmul.f32 %v441_v19, %v135_v42  ;;  %v102_v55 = vsub.f32 %v94_v29, %v98_v44  ;;  %vm533_vm7 = vcmp.lt.f32.partialorder %v137_v16, 0.0004427343 }
  0x55   :  { %v103_v18 = vsub.f32 %v95_v32, %v99_v46  ;;  %v235_v57 = vmul.f32 -0.5, %v455_v39  ;;  %v236_v33 = vadd.f32 0.75, %v232_v48  ;;  %v130_v58 = vsel %vm523_vm6, %v127_v2, %v124_v49 }
  0x56   :  { %v140_v59 = vadd.f32 %v112_v52, %v100_v47  ;;  %v141_v60 = vadd.f32 %v121_v53, %v101_v17  ;;  %v237_v61 = vadd.f32 0.75, %v233_v51  ;;  %v139_v19 = vsel %vm533_vm7, %v136_v54, %v133_v3 }
  0x57   :  { %vm198_vm8 = vcmp.eq.f32.partialorder %v481_v9, inf  ;;  %vm200_vm9 = vcmp.eq.f32.partialorder %v481_v9, 0.0  ;;  %v201_v63 = vand.u32 2147483648, %v481_v9  ;;  %vm205_vm10 = vcmp.eq.f32.partialorder %v484_v12, inf }
  0x58   :  { %vm207_vm11 = vcmp.eq.f32.partialorder %v484_v12, 0.0  ;;  %v208_v4 = vand.u32 2147483648, %v484_v12  ;;  %vm212_vm12 = vcmp.eq.f32.partialorder %v487_v15, inf  ;;  %vm214_vm13 = vcmp.eq.f32.partialorder %v487_v15, 0.0 }
  0x59   :  { %v215_v7 = vand.u32 2147483648, %v487_v15  ;;  %vm219_vm14 = vcmp.eq.f32.partialorder %v491_v23, inf  ;;  %v222_v13 = vand.u32 2147483648, %v491_v23  ;;  %vm221_vm15 = vcmp.eq.f32.partialorder %v491_v23, 0.0 }
  0x5a   :  { %v142_v22 = vadd.f32 %v130_v58, %v102_v55  ;;  %v143_v27 = vadd.f32 %v139_v19, %v103_v18  ;;  %v238_v35 = vadd.f32 0.75, %v234_v56  ;;  %v239_v40 = vadd.f32 0.75, %v235_v57 }
  0x5b   :  { %vm272_vm0 = vcmask 0  }
  0x5d   :  { %v324_v62 = vpop.eup %323 }
  0x5e   :  { %v326_v36 = vpop.eup %325  ;;  %v197_v39 = vmul.f32 %v324_v62, %v481_v9 }
  0x5f   :  { %v328_v5 = vpop.eup %327  ;;  %v204_v6 = vmul.f32 %v326_v36, %v484_v12 }
  0x60   :  { %v330_v8 = vpop.eup %329  ;;  %v199_v10 = vsel %vm198_vm8, %v481_v9, %v197_v39  ;;  %v211_v11 = vmul.f32 %v328_v5, %v487_v15 }
  0x61   :  { %v202_v14 = vsel %vm200_vm9, %v201_v63, %v199_v10  ;;  %v206_v20 = vsel %vm205_vm10, %v484_v12, %v204_v6  ;;  %v218_v21 = vmul.f32 %v330_v8, %v491_v23 }
  0x62   :  { %v209_v24 = vsel %vm207_vm11, %v208_v4, %v206_v20  ;;  %v213_v25 = vsel %vm212_vm12, %v487_v15, %v211_v11  ;;  %v224_v26 = vmul.f32 %v202_v14, %v481_v9 }
  0x63   :  { %v216_v28 = vsel %vm214_vm13, %v215_v7, %v213_v25  ;;  %v220_v29 = vsel %vm219_vm14, %v491_v23, %v218_v21  ;;  %v225_v31 = vmul.f32 %v209_v24, %v484_v12 }
  0x64   :  { %v223_v32 = vsel %vm221_vm15, %v222_v13, %v220_v29  ;;  %v226_v34 = vmul.f32 %v216_v28, %v487_v15  ;;  %v228_v0 = vmul.f32 %v224_v26, %v140_v59 }
  0x65   :  { %v227_v37 = vmul.f32 %v223_v32, %v491_v23  ;;  %v229_v38 = vmul.f32 %v225_v31, %v141_v60 }
  0x66   :  { %v230_v41 = vmul.f32 %v226_v34, %v142_v22  ;;  %v240_v42 = vmul.f32 %v236_v33, %v228_v0 }
  0x67   :  { %v231_v9 = vmul.f32 %v227_v37, %v143_v27  ;;  %v241_v43 = vmul.f32 %v237_v61, %v229_v38 }
  0x68   :  { %v242_v44 = vmul.f32 %v238_v35, %v230_v41 }
  0x69   :  { %v243_v1 = vmul.f32 %v239_v40, %v231_v9 }
  0x6a   :  { %v246_v45 = vadd.f32 %v242_v44, %v240_v42 }
  0x6b   :  { %v247_v16 = vadd.f32 %v243_v1, %v241_v43 }
  0x6c   :  { %v257_v46 = vrot.slane %v246_v45, 4 }
  0x6d   :  { %v263_v47 = vrot.slane %v247_v16, 4 }
  0x6e   :  { %v258_v12 = vadd.f32 %v257_v46, %v246_v45 }
  0x6f   :  { %v264_v17 = vadd.f32 %v263_v47, %v247_v16 }
  0x70   :  { %v259_v48 = vrot.slane %v258_v12, 2 }
  0x71   :  { %v265_v15 = vrot.slane %v264_v17, 2 }
  0x72   :  { %v260_v49 = vadd.f32 %v259_v48, %v258_v12 }
  0x73   :  { %v266_v2 = vadd.f32 %v265_v15, %v264_v17 }
  0x74   :  { %v261_v50 = vrot.slane %v260_v49, 1 }
  0x75   :  { %v267_v23 = vrot.slane %v266_v2, 1 }
  0x76   :  { %v262_v51 = vadd.f32 %v261_v50, %v260_v49 }
  0x77   :  { %v268_v52 = vadd.f32 %v267_v23, %v266_v2 }
  0x79   :  { %v269_v53 = vadd.f32 %v268_v52, %v262_v51 }
  0x7b   :  { %270 = vadd.xlane.f32.xlu0 %v269_v53 }
 0x104   :  { %v271_v3 = vpop.xlane.xlu0 %270 }
 0x105   :  { %273 = vst.msk [vmem:[#allocation8] sm:$0x1] %vm272_vm0, %v271_v3 }
 0x106   :  { %382 = shalt.err (!%p379_p0)
}
 0x107   :  { %283 = dma.vmem_to_hbm [thread:$0]  %s281_s1, 16, %s578_s2, [#allocation5]  }
 0x108   :  { %395 = dma.done.wait [#allocation5], 16  }
 0x109   :  { %396 = vsyncadd [#allocation5], 4294967280 }
 0x10a   :  { %287 = vsyncpa [#allocation4], 1 }
 0x10b   :  { %288 = vsyncpa [#allocation7], 1 }
 0x10c   :  { %289 = vsyncpa [#allocation5], 1 }

</bundles_post_ra>
